<compile_context>
chip_gen: v7x
topology: tpu7x:2x2x1
jax: 0.10.0
libtpu: 0.0.40
codegen_flags: <defaults>
</compile_context>

<pallas_src>
from functools import partial

import jax
import jax.numpy as jnp
from jax.experimental import pallas as pl
from jax.experimental.pallas import tpu as pltpu


def value_net_kernel(x_ref, w1_ref, b1_ref, w2_ref, b2_ref, w3_ref, b3_ref, o_ref):
    num_inputs, tile_b = x_ref.shape

    # Lane sub-chunk (<=512) that divides the block: caps vreg pressure so the
    # straight-line body never materializes full [H, tile_b] intermediates.
    if tile_b % 512 == 0:
        chunk = 512
    elif tile_b % 256 == 0:
        chunk = 256
    else:
        chunk = 128
    chunk = min(chunk, tile_b)
    n_chunks = tile_b // chunk

    # Hoisted once per grid step (loop-invariant; avoids per-chunk broadcasts).
    w1_cols = [w1_ref[:, k:k + 1] for k in range(num_inputs)]   # each [H, 1]
    b1 = b1_ref[...]                                            # [H, 1]
    w2 = w2_ref[...]                                            # [H, H]
    b2 = b2_ref[...]                                            # [H, 1]
    w3 = w3_ref[...]                                            # [H, 1]
    b3 = b3_ref[...]                                            # [1, 1]

    # Static Python loop -> static (zero-cost) ref slices; each chunk's
    # intermediates die before the next chunk starts.
    for c in range(n_chunks):
        off = c * chunk
        x = x_ref[:, off:off + chunk]                           # [NI, chunk]

        # ---- layer 1: K = num_inputs is tiny -> VPU broadcast-FMAs,
        # bias folded into the accumulator init (saves one VALU pass).
        acc = w1_cols[0] * x[0:1, :] + b1                       # [H, chunk]
        for k in range(1, num_inputs):
            acc = acc + w1_cols[k] * x[k:k + 1, :]
        h1 = jnp.maximum(acc, 0.0)

        # ---- layer 2: MXU matmul, f32 accumulation (vex slot is nearly idle).
        h2 = jnp.dot(w2, h1, preferred_element_type=jnp.float32) + b2
        h2 = jnp.maximum(h2, 0.0)                               # [H, chunk]

        # ---- layer 3: single output row -> VPU multiply + sublane reduce
        # (XLU), lane-dense [1, chunk] result.
        out = jnp.sum(w3 * h2, axis=0, keepdims=True) + b3
        o_ref[:, off:off + chunk] = out.astype(o_ref.dtype)


def _round_up(x, m):
    return ((x + m - 1) // m) * m


def _choose_tile(batch, max_tile_b):
    # Tile must be a multiple of 128 lanes (round user cap DOWN for robustness).
    max_tile_b = max(128, (int(max_tile_b) // 128) * 128)
    b128 = _round_up(batch, 128)
    # Large blocks to amortize per-step overhead, but aim for >= 2 grid steps
    # so the "parallel" axis can shard across v7x's two TensorCores.
    tile_b = min(max_tile_b, max(128, _round_up(pl.cdiv(b128, 2), 128)))
    b_pad = _round_up(batch, tile_b)
    return tile_b, b_pad


@partial(jax.jit, static_argnames=("max_tile_b",))
def value_network_forward(state, params, *, max_tile_b=8192):
    """state: [B, num_inputs] f32 -> [B, 1] f32 (matches ValueNetwork.forward)."""
    w1, b1, w2, b2, w3, b3 = params
    batch, num_inputs = state.shape
    hidden = w1.shape[0]

    tile_b, b_pad = _choose_tile(batch, max_tile_b)

    # Transposed, lane-dense input: [num_inputs, Bp]; zero-pad the batch tail so
    # every grid step is a full block (padded columns are sliced away below).
    # Under jit this transpose+pad fuses with the surrounding graph.
    x_t = jnp.pad(state.T, ((0, 0), (0, b_pad - batch)))

    resident = lambda i: (0, 0)   # weights / biases stay VMEM-resident

    out = pl.pallas_call(
        value_net_kernel,
        out_shape=jax.ShapeDtypeStruct((1, b_pad), jnp.float32),
        grid=(b_pad // tile_b,),
        in_specs=[
            pl.BlockSpec((num_inputs, tile_b), lambda i: (0, i)),   # state (tiled)
            pl.BlockSpec((hidden, num_inputs), resident),           # w1
            pl.BlockSpec((hidden, 1), resident),                    # b1
            pl.BlockSpec((hidden, hidden), resident),               # w2
            pl.BlockSpec((hidden, 1), resident),                    # b2
            pl.BlockSpec((hidden, 1), resident),                    # w3 (column)
            pl.BlockSpec((1, 1), resident),                         # b3
        ],
        out_specs=pl.BlockSpec((1, tile_b), lambda i: (0, i)),
        compiler_params=pltpu.CompilerParams(
            dimension_semantics=("parallel",)),   # shard batch across TCs
    )(x_t, w1, b1, w2, b2, w3, b3)

    return out[:, :batch].T   # back to [B, 1]; do NOT drop this slice.


def init_params(key, num_inputs, hidden_size):
    """PyTorch nn.Linear default init: U(-1/sqrt(fan_in), +1/sqrt(fan_in)).

    Stored layouts: w1 [hidden, num_inputs], w2 [hidden, hidden],
    w3 [hidden, 1] (column), b1/b2 [hidden, 1], b3 [1, 1].
    """
    def linear_init(k, fan_in, fan_out):
        k_w, k_b = jax.random.split(k)
        bound = 1.0 / jnp.sqrt(jnp.float32(fan_in))
        w = jax.random.uniform(k_w, (fan_out, fan_in), jnp.float32, -bound, bound)
        b = jax.random.uniform(k_b, (fan_out, 1), jnp.float32, -bound, bound)
        return w, b

    k1, k2, k3 = jax.random.split(key, 3)
    w1, b1 = linear_init(k1, num_inputs, hidden_size)
    w2, b2 = linear_init(k2, hidden_size, hidden_size)
    w3, b3 = linear_init(k3, hidden_size, 1)
    return (w1, b1, w2, b2, w3.T, b3)   # w3 stored as a [hidden, 1] column


def reference_forward(state, params):
    w1, b1, w2, b2, w3, b3 = params
    x = jnp.maximum(state @ w1.T + b1.T, 0.0)
    x = jnp.maximum(x @ w2.T + b2.T, 0.0)
    return x @ w3 + b3.T


if __name__ == "__main__":
    num_inputs = 4
    hidden_size = 32

    key = jax.random.PRNGKey(0)
    k_params, k1, k2, k3 = jax.random.split(key, 4)
    params = init_params(k_params, num_inputs, hidden_size)

    # small batch (single grid step, single chunk)
    state1 = jax.random.normal(k1, (8, num_inputs), jnp.float32)
    out1 = jax.block_until_ready(value_network_forward(state1, params))
    ref1 = reference_forward(state1, params)
    assert out1.shape == (8, 1), out1.shape
    assert jnp.allclose(out1, ref1, atol=1e-5, rtol=1e-5), "mismatch vs reference (B=8)"

    # ragged batch with small cap (exercises multi-step grid + tail padding)
    state2 = jax.random.normal(k2, (300, num_inputs), jnp.float32)
    out2 = jax.block_until_ready(value_network_forward(state2, params, max_tile_b=128))
    ref2 = reference_forward(state2, params)
    assert out2.shape == (300, 1), out2.shape
    assert jnp.allclose(out2, ref2, atol=1e-5, rtol=1e-5), "mismatch vs reference (B=300)"

    # larger batch (two grid steps for megacore, multi-chunk inner loop)
    state3 = jax.random.normal(k3, (2048, num_inputs), jnp.float32)
    out3 = jax.block_until_ready(value_network_forward(state3, params))
    ref3 = reference_forward(state3, params)
    assert out3.shape == (2048, 1), out3.shape
    assert jnp.allclose(out3, ref3, atol=1e-5, rtol=1e-5), "mismatch vs reference (B=2048)"

    print("KERNEL_OK")
</pallas_src>

<mosaic_0001>
module attributes {stable_mosaic.version = 11 : i64} {
  func.func @value_net_kernel(%arg0: i32, %arg1: memref<4x128xf32, #tpu.memory_space<vmem>>, %arg2: memref<32x4xf32, #tpu.memory_space<vmem>>, %arg3: memref<32x1xf32, #tpu.memory_space<vmem>>, %arg4: memref<32x32xf32, #tpu.memory_space<vmem>>, %arg5: memref<32x1xf32, #tpu.memory_space<vmem>>, %arg6: memref<32x1xf32, #tpu.memory_space<vmem>>, %arg7: memref<1x1xf32, #tpu.memory_space<vmem>>, %arg8: memref<1x128xf32, #tpu.memory_space<vmem>>) attributes {dimension_semantics = [#tpu.dimension_semantics<parallel>], iteration_bounds = array<i64: 1>, scalar_prefetch = 0 : i64, scratch_operands = 0 : i64, tpu.core_type = #tpu.core_type<tc>, window_params = [{transform_indices = @transform_0, window_bounds = array<i64: 4, 128>}, {pipeline_mode = #tpu.pipeline_mode<synchronous>, transform_indices = @transform_1, window_bounds = array<i64: 32, 4>}, {pipeline_mode = #tpu.pipeline_mode<synchronous>, transform_indices = @transform_2, window_bounds = array<i64: 32, 1>}, {pipeline_mode = #tpu.pipeline_mode<synchronous>, transform_indices = @transform_3, window_bounds = array<i64: 32, 32>}, {pipeline_mode = #tpu.pipeline_mode<synchronous>, transform_indices = @transform_4, window_bounds = array<i64: 32, 1>}, {pipeline_mode = #tpu.pipeline_mode<synchronous>, transform_indices = @transform_5, window_bounds = array<i64: 32, 1>}, {pipeline_mode = #tpu.pipeline_mode<synchronous>, transform_indices = @transform_6, window_bounds = array<i64: 1, 1>}, {transform_indices = @transform_7, window_bounds = array<i64: 1, 128>}]} {
    %c0 = arith.constant 0 : index
    %c0_0 = arith.constant 0 : index
    %0 = vector.load %arg2[%c0, %c0_0] : memref<32x4xf32, #tpu.memory_space<vmem>>, vector<32x1xf32>
    %c0_1 = arith.constant 0 : index
    %c1 = arith.constant 1 : index
    %1 = vector.load %arg2[%c0_1, %c1] : memref<32x4xf32, #tpu.memory_space<vmem>>, vector<32x1xf32>
    %c0_2 = arith.constant 0 : index
    %c2 = arith.constant 2 : index
    %2 = vector.load %arg2[%c0_2, %c2] : memref<32x4xf32, #tpu.memory_space<vmem>>, vector<32x1xf32>
    %c0_3 = arith.constant 0 : index
    %c3 = arith.constant 3 : index
    %3 = vector.load %arg2[%c0_3, %c3] : memref<32x4xf32, #tpu.memory_space<vmem>>, vector<32x1xf32>
    %c0_4 = arith.constant 0 : index
    %c0_5 = arith.constant 0 : index
    %4 = vector.load %arg3[%c0_4, %c0_5] : memref<32x1xf32, #tpu.memory_space<vmem>>, vector<32x1xf32>
    %c0_6 = arith.constant 0 : index
    %c0_7 = arith.constant 0 : index
    %5 = vector.load %arg4[%c0_6, %c0_7] : memref<32x32xf32, #tpu.memory_space<vmem>>, vector<32x32xf32>
    %c0_8 = arith.constant 0 : index
    %c0_9 = arith.constant 0 : index
    %6 = vector.load %arg5[%c0_8, %c0_9] : memref<32x1xf32, #tpu.memory_space<vmem>>, vector<32x1xf32>
    %c0_10 = arith.constant 0 : index
    %c0_11 = arith.constant 0 : index
    %7 = vector.load %arg6[%c0_10, %c0_11] : memref<32x1xf32, #tpu.memory_space<vmem>>, vector<32x1xf32>
    %c0_12 = arith.constant 0 : index
    %c0_13 = arith.constant 0 : index
    %8 = vector.load %arg7[%c0_12, %c0_13] : memref<1x1xf32, #tpu.memory_space<vmem>>, vector<1x1xf32>
    %c0_14 = arith.constant 0 : index
    %c0_15 = arith.constant 0 : index
    %9 = vector.load %arg1[%c0_14, %c0_15] : memref<4x128xf32, #tpu.memory_space<vmem>>, vector<4x128xf32>
    %10 = vector.extract_strided_slice %9 {offsets = [0, 0], sizes = [1, 128], strides = [1, 1]} : vector<4x128xf32> to vector<1x128xf32>
    %11 = vector.broadcast %0 : vector<32x1xf32> to vector<32x128xf32>
    %12 = vector.broadcast %10 : vector<1x128xf32> to vector<32x128xf32>
    %13 = arith.mulf %11, %12 : vector<32x128xf32>
    %14 = vector.broadcast %4 : vector<32x1xf32> to vector<32x128xf32>
    %15 = arith.addf %13, %14 : vector<32x128xf32>
    %16 = vector.extract_strided_slice %9 {offsets = [1, 0], sizes = [1, 128], strides = [1, 1]} : vector<4x128xf32> to vector<1x128xf32>
    %17 = vector.broadcast %1 : vector<32x1xf32> to vector<32x128xf32>
    %18 = vector.broadcast %16 : vector<1x128xf32> to vector<32x128xf32>
    %19 = arith.mulf %17, %18 : vector<32x128xf32>
    %20 = arith.addf %15, %19 : vector<32x128xf32>
    %21 = vector.extract_strided_slice %9 {offsets = [2, 0], sizes = [1, 128], strides = [1, 1]} : vector<4x128xf32> to vector<1x128xf32>
    %22 = vector.broadcast %2 : vector<32x1xf32> to vector<32x128xf32>
    %23 = vector.broadcast %21 : vector<1x128xf32> to vector<32x128xf32>
    %24 = arith.mulf %22, %23 : vector<32x128xf32>
    %25 = arith.addf %20, %24 : vector<32x128xf32>
    %26 = vector.extract_strided_slice %9 {offsets = [3, 0], sizes = [1, 128], strides = [1, 1]} : vector<4x128xf32> to vector<1x128xf32>
    %27 = vector.broadcast %3 : vector<32x1xf32> to vector<32x128xf32>
    %28 = vector.broadcast %26 : vector<1x128xf32> to vector<32x128xf32>
    %29 = arith.mulf %27, %28 : vector<32x128xf32>
    %30 = arith.addf %25, %29 : vector<32x128xf32>
    %cst = arith.constant 0.000000e+00 : f32
    %31 = vector.broadcast %cst : f32 to vector<32x128xf32>
    %32 = arith.maximumf %30, %31 : vector<32x128xf32>
    %cst_16 = arith.constant dense<0.000000e+00> : vector<32x128xf32>
    %33 = tpu.matmul %5, %32, %cst_16 {dimension_numbers = #tpu.dot_dimension_numbers<[1], [0], [0], [1], [0, 0, 1, 1], [], []>} : vector<32x32xf32>, vector<32x128xf32>, vector<32x128xf32> -> vector<32x128xf32>
    %34 = vector.broadcast %6 : vector<32x1xf32> to vector<32x128xf32>
    %35 = arith.addf %33, %34 : vector<32x128xf32>
    %cst_17 = arith.constant 0.000000e+00 : f32
    %36 = vector.broadcast %cst_17 : f32 to vector<32x128xf32>
    %37 = arith.maximumf %35, %36 : vector<32x128xf32>
    %38 = vector.broadcast %7 : vector<32x1xf32> to vector<32x128xf32>
    %39 = arith.mulf %38, %37 : vector<32x128xf32>
    %cst_18 = arith.constant dense<0.000000e+00> : vector<128xf32>
    %40 = vector.multi_reduction <add>, %39, %cst_18 [0] : vector<32x128xf32> to vector<128xf32>
    %41 = vector.shape_cast %40 : vector<128xf32> to vector<1x128xf32>
    %42 = vector.broadcast %8 : vector<1x1xf32> to vector<1x128xf32>
    %43 = arith.addf %41, %42 : vector<1x128xf32>
    %c0_19 = arith.constant 0 : index
    %c0_20 = arith.constant 0 : index
    %44 = vector.load %arg8[%c0_19, %c0_20] : memref<1x128xf32, #tpu.memory_space<vmem>>, vector<1x128xf32>
    tpu.vector_store %arg8[%c0_19, %c0_20], %43 {strides = array<i32>} : memref<1x128xf32, #tpu.memory_space<vmem>>, vector<1x128xf32>,
    return
  }
  func.func @transform_0(%arg0: i32) -> (i32, i32) {
    %c0_i32 = arith.constant 0 : i32
    %c0_i32_0 = arith.constant 0 : i32
    return %c0_i32, %arg0 : i32, i32
  }
  func.func @transform_1(%arg0: i32) -> (i32, i32) {
    %c0_i32 = arith.constant 0 : i32
    %c0_i32_0 = arith.constant 0 : i32
    %c0_i32_1 = arith.constant 0 : i32
    return %c0_i32, %c0_i32_0 : i32, i32
  }
  func.func @transform_2(%arg0: i32) -> (i32, i32) {
    %c0_i32 = arith.constant 0 : i32
    %c0_i32_0 = arith.constant 0 : i32
    %c0_i32_1 = arith.constant 0 : i32
    return %c0_i32, %c0_i32_0 : i32, i32
  }
  func.func @transform_3(%arg0: i32) -> (i32, i32) {
    %c0_i32 = arith.constant 0 : i32
    %c0_i32_0 = arith.constant 0 : i32
    %c0_i32_1 = arith.constant 0 : i32
    return %c0_i32, %c0_i32_0 : i32, i32
  }
  func.func @transform_4(%arg0: i32) -> (i32, i32) {
    %c0_i32 = arith.constant 0 : i32
    %c0_i32_0 = arith.constant 0 : i32
    %c0_i32_1 = arith.constant 0 : i32
    return %c0_i32, %c0_i32_0 : i32, i32
  }
  func.func @transform_5(%arg0: i32) -> (i32, i32) {
    %c0_i32 = arith.constant 0 : i32
    %c0_i32_0 = arith.constant 0 : i32
    %c0_i32_1 = arith.constant 0 : i32
    return %c0_i32, %c0_i32_0 : i32, i32
  }
  func.func @transform_6(%arg0: i32) -> (i32, i32) {
    %c0_i32 = arith.constant 0 : i32
    %c0_i32_0 = arith.constant 0 : i32
    %c0_i32_1 = arith.constant 0 : i32
    return %c0_i32, %c0_i32_0 : i32, i32
  }
  func.func @transform_7(%arg0: i32) -> (i32, i32) {
    %c0_i32 = arith.constant 0 : i32
    %c0_i32_0 = arith.constant 0 : i32
    return %c0_i32, %arg0 : i32, i32
  }
}

</mosaic_0001>

<bundles_post_ra>
// kernel: value_network_forward.1
= control target key start
LH: loop header
LB: loop body
LE: loop exit
PB: predicated region body
PF: predicated region fallthrough
CT: control target
= control target key end

     0   :  { %v416_v0 = vmov 0   ;;  %v417_v6 = vmov 1   ;;  %v418_v9 = vmov 2   ;;  %v419_v10 = vmov 3   ;;  %s543_s2 = inlined_call_operand.vmem [shape: f32[32,1], index: 2, kind: input, shape index: {}]   ;;  %s544_s1 = inlined_call_operand.vmem [shape: f32[32,4], index: 1, kind: input, shape index: {}]   ;;  %s545_s3 = inlined_call_operand.vmem [shape: f32[32,32], index: 3, kind: input, shape index: {}]   ;;  %s546_s4 = inlined_call_operand.vmem [shape: f32[32,1], index: 4, kind: input, shape index: {}]   ;;  %s547_s6 = inlined_call_operand.<no memory space> [shape: f32[1,1], index: 6, kind: input, shape index: {}]   ;;  %s548_s5 = inlined_call_operand.vmem [shape: f32[32,1], index: 5, kind: input, shape index: {}]   ;;  %s549_s0 = inlined_call_operand.vmem [shape: f32[4,128], index: 0, kind: input, shape index: {}]   ;;  %s550_s7 = inlined_call_operand.vmem [shape: f32[1,128], index: 7, kind: output, shape index: {}]  }
   0x1   :  { %403 = vset.pattern.permute.xlu1 %v416_v0  ;;  %402 = vset.pattern.permute.xlu0 %v416_v0  ;;  %v32_v1 = vld [vmem:[%s543_s2] sm:$0xff]  ;;  %v33_v3 = vld [vmem:[%s543_s2 + $0x8] sm:$0xff]  ;;  %v31_v5 = vld [vmem:[%s544_s1 + $0x18] sm:$0xff]  ;;  %vm210_vm0 = vcmask 261120   ;;  %v12_v16 = vstv %s547_s6  ;;  %v70_v30 = vlaneseq }
   0x2   :  { %v28_v2 = vld [vmem:[%s544_s1] sm:$0xff]  ;;  %80 = vperm.xlu1 %403, %v32_v1   ;;  %v29_v4 = vld [vmem:[%s544_s1 + $0x8] sm:$0xff]  ;;  %v34_v7 = vld [vmem:[%s543_s2 + $0x10] sm:$0xff]  ;;  %13 = vst [vmem:[#allocation2] sm:$0x1] %v12_v16 }
   0x3   :  { %52 = vperm.xlu0 %402, %v28_v2   ;;  %v30_v8 = vld [vmem:[%s544_s1 + $0x10] sm:$0xff]  ;;  %v35_v11 = vld [vmem:[%s543_s2 + $0x18] sm:$0xff]  ;;  %v36_v12 = vld [vmem:[%s545_s3] sm:$0xff]  ;;  %v519_v33 = vshrl.u32 %v70_v30, 7 }
   0x4   :  { %v38_v13 = vld [vmem:[%s545_s3 + $0x10] sm:$0xff]  ;;  %380 = vmatprep.mubr.msk.f32.mxu0 %vm210_vm0, %v36_v12  ;;  %v41_v14 = vld [vmem:[%s546_s4 + $0x8] sm:$0xff]  ;;  %v40_v15 = vld [vmem:[%s546_s4] sm:$0xff] }
   0x5   :  { %383 = vmatprep.mubr.msk.f32.mxu1 %vm210_vm0, %v38_v13  ;;  %v42_v17 = vld [vmem:[%s546_s4 + $0x10] sm:$0xff]  ;;  %v43_v18 = vld [vmem:[%s546_s4 + $0x18] sm:$0xff]  ;;  %v44_v19 = vld [vmem:[%s548_s5] sm:$0xff]  ;;  %v72_v36 = vsub.s32 0, %v519_v33  ;;  %v120_v37 = vsub.s32 1, %v519_v33  ;;  %v148_v42 = vsub.s32 2, %v519_v33 }
   0x6   :  { %85 = vperm.xlu1 %403, %v33_v3   ;;  %v45_v20 = vld [vmem:[%s548_s5 + $0x8] sm:$0xff]  ;;  %v46_v21 = vld [vmem:[%s548_s5 + $0x10] sm:$0xff]  ;;  %v47_v22 = vld [vmem:[%s548_s5 + $0x18] sm:$0xff]  ;;  %v176_v45 = vsub.s32 3, %v519_v33 }
   0x7   :  { %57 = vperm.xlu0 %402, %v29_v4   ;;  %v49_v38 = vld [vmem:[%s549_s0] sm:$0xf]  ;;  %v39_v30 = vld [vmem:[%s545_s3 + $0x18] sm:$0xff] }
   0x8   :  { %v73_v40 = vrot.slane %v49_v38, %v72_v36  ;;  %v121_v41 = vrot.slane %v49_v38, %v120_v37  ;;  %v149_v49 = vrot.slane %v49_v38, %v148_v42  ;;  %v177_v53 = vrot.slane %v49_v38, %v176_v45 }
   0x9   :  { %v48_v23 = vld [vmem:[#allocation2] sm:$0x1] }
   0xa   :  { %404 = vset.pattern.permute.xlu1 %v417_v6 }
   0xb   :  { %67 = vperm.xlu0 %402, %v31_v5   ;;  %107 = vperm.xlu1 %404, %v29_v4  }
   0xf   :  { %90 = vperm.xlu0 %402, %v34_v7   ;;  %405 = vset.pattern.permute.xlu1 %v416_v0 }
  0x10   :  { %62 = vperm.xlu1 %405, %v30_v8  }
  0x13   :  { %407 = vset.pattern.permute.xlu0 %v417_v6 }
  0x14   :  { %103 = vperm.xlu0 %407, %v28_v2   ;;  %406 = vset.pattern.permute.xlu1 %v418_v9 }
  0x15   :  { %131 = vperm.xlu1 %406, %v28_v2  }
  0x18   :  { %111 = vperm.xlu0 %407, %v30_v8  }
  0x19   :  { %135 = vperm.xlu1 %406, %v29_v4  }
  0x1c   :  { %411 = vset.pattern.permute.xlu0 %v419_v10 }
  0x1d   :  { %163 = vperm.xlu0 %411, %v29_v4   ;;  %408 = vset.pattern.permute.xlu1 %v416_v0 }
  0x1e   :  { %95 = vperm.xlu1 %408, %v35_v11  }
  0x21   :  { %167 = vperm.xlu0 %411, %v30_v8  }
  0x22   :  { %409 = vset.pattern.permute.xlu1 %v417_v6 }
  0x23   :  { %115 = vperm.xlu1 %409, %v31_v5  }
  0x25   :  { %414 = vset.pattern.permute.xlu0 %v416_v0 }
  0x26   :  { %192 = vperm.xlu0 %414, %v40_v15  }
  0x27   :  { %410 = vset.pattern.permute.xlu1 %v419_v10 }
  0x28   :  { %159 = vperm.xlu1 %410, %v28_v2  }
  0x2a   :  { %207 = vperm.xlu0 %414, %v43_v18  }
  0x2c   :  { %412 = vset.pattern.permute.xlu1 %v418_v9 }
  0x2d   :  { %139 = vperm.xlu1 %412, %v30_v8  }
  0x2e   :  { %319 = vperm.xlu0 %414, %v45_v20  }
  0x31   :  { %143 = vperm.xlu1 %412, %v31_v5  }
  0x32   :  { %329 = vperm.xlu0 %414, %v47_v22  }
  0x35   :  { %413 = vset.pattern.permute.xlu1 %v419_v10 }
  0x36   :  { %171 = vperm.xlu1 %413, %v31_v5  }
  0x3a   :  { %415 = vset.pattern.permute.xlu1 %v416_v0 }
  0x3b   :  { %197 = vperm.xlu1 %415, %v41_v14  }
  0x3f   :  { %202 = vperm.xlu1 %415, %v42_v17  }
  0x43   :  { %314 = vperm.xlu1 %415, %v44_v19  }
  0x47   :  { %324 = vperm.xlu1 %415, %v46_v21  }
  0x4b   :  { %347 = vperm.xlu1 %415, %v48_v23  }
  0x81   :  { %v81_v24 = vpop.permute.xlu1 %80 }
  0x82   :  { %v53_v25 = vpop.permute.xlu0 %52 }
  0x83   :  { %v74_v47 = vmul.f32 %v73_v40, %v53_v25 }
  0x85   :  { %v86_v26 = vpop.permute.xlu1 %85  ;;  %v98_v55 = vadd.f32 %v81_v24, %v74_v47 }
  0x86   :  { %v58_v27 = vpop.permute.xlu0 %57 }
  0x87   :  { %v75_v44 = vmul.f32 %v73_v40, %v58_v27 }
  0x89   :  { %v99_v50 = vadd.f32 %v86_v26, %v75_v44 }
  0x8a   :  { %v68_v28 = vpop.permute.xlu0 %67  ;;  %v108_v29 = vpop.permute.xlu1 %107 }
  0x8b   :  { %v123_v48 = vmul.f32 %v121_v41, %v108_v29  ;;  %v77_v12 = vmul.f32 %v73_v40, %v68_v28  ;;  %v37_v29 = vld [vmem:[%s545_s3 + $0x8] sm:$0xff] }
  0x8d   :  { %v127_v56 = vadd.f32 %v123_v48, %v99_v50 }
  0x8e   :  { %v91_v31 = vpop.permute.xlu0 %90 }
  0x8f   :  { %v63_v32 = vpop.permute.xlu1 %62 }
  0x90   :  { %v76_v2 = vmul.f32 %v73_v40, %v63_v32 }
  0x92   :  { %v100_v8 = vadd.f32 %v91_v31, %v76_v2 }
  0x93   :  { %v104_v35 = vpop.permute.xlu0 %103 }
  0x94   :  { %v132_v34 = vpop.permute.xlu1 %131  ;;  %v122_v51 = vmul.f32 %v121_v41, %v104_v35 }
  0x95   :  { %v150_v59 = vmul.f32 %v149_v49, %v132_v34 }
  0x96   :  { %v126_v58 = vadd.f32 %v122_v51, %v98_v55 }
  0x97   :  { %v112_v43 = vpop.permute.xlu0 %111 }
  0x98   :  { %v136_v39 = vpop.permute.xlu1 %135  ;;  %v154_v63 = vadd.f32 %v150_v59, %v126_v58  ;;  %v124_v4 = vmul.f32 %v121_v41, %v112_v43 }
  0x99   :  { %v151_v52 = vmul.f32 %v149_v49, %v136_v39 }
  0x9a   :  { %v128_v13 = vadd.f32 %v124_v4, %v100_v8 }
  0x9b   :  { %v155_v60 = vadd.f32 %v151_v52, %v127_v56 }
  0x9c   :  { %v164_v54 = vpop.permute.xlu0 %163 }
  0x9d   :  { %v96_v46 = vpop.permute.xlu1 %95  ;;  %v179_v61 = vmul.f32 %v177_v53, %v164_v54 }
  0x9e   :  { %v101_v16 = vadd.f32 %v96_v46, %v77_v12 }
  0x9f   :  { %v183_v0 = vadd.f32 %v179_v61, %v155_v60 }
  0xa0   :  { %v168_v11 = vpop.permute.xlu0 %167 }
  0xa1   :  { %v187_v5 = vmax.f32 %v183_v0, 0.0  ;;  %v180_v18 = vmul.f32 %v177_v53, %v168_v11 }
  0xa2   :  { %v116_v57 = vpop.permute.xlu1 %115 }
  0xa3   :  { %v125_v14 = vmul.f32 %v121_v41, %v116_v57 }
  0xa5   :  { %v129_v20 = vadd.f32 %v125_v14, %v101_v16  ;;  %v193_v32 = vpop.permute.xlu0 %192 }
  0xa7   :  { %v160_v62 = vpop.permute.xlu1 %159 }
  0xa8   :  { %v178_v1 = vmul.f32 %v177_v53, %v160_v62 }
  0xa9   :  { %v208_v35 = vpop.permute.xlu0 %207 }
  0xaa   :  { %v182_v3 = vadd.f32 %v178_v1, %v154_v63 }
  0xac   :  { %v186_v6 = vmax.f32 %v182_v3, 0.0  ;;  %v140_v7 = vpop.permute.xlu1 %139 }
  0xad   :  { %v152_v10 = vmul.f32 %v149_v49, %v140_v7  ;;  %v320_v46 = vpop.permute.xlu0 %319 }
  0xae   :  { %v386_v9 = vpack.c.bf16 %v187_v5, %v186_v6 }
  0xaf   :  { %v156_v17 = vadd.f32 %v152_v10, %v128_v13 }
  0xb0   :  { %v144_v15 = vpop.permute.xlu1 %143  ;;  %387 = vmatprep.subr.bf16.mxu0 %v386_v9  ;;  %394 = vmatprep.subr.bf16.mxu1 %v386_v9 }
  0xb1   :  { %389 = vmatpush3.bf16.msra.mxu0 %v386_v9  ;;  %396 = vmatpush3.bf16.msra.mxu1 %v386_v9  ;;  %v153_v19 = vmul.f32 %v149_v49, %v144_v15  ;;  %v184_v22 = vadd.f32 %v180_v18, %v156_v17  ;;  %v330_v56 = vpop.permute.xlu0 %329 }
  0xb3   :  { %v157_v23 = vadd.f32 %v153_v19, %v129_v20  ;;  %v188_v26 = vmax.f32 %v184_v22, 0.0 }
  0xb5   :  { %v172_v21 = vpop.permute.xlu1 %171 }
  0xb6   :  { %v181_v24 = vmul.f32 %v177_v53, %v172_v21 }
  0xb8   :  { %v185_v25 = vadd.f32 %v181_v24, %v157_v23 }
  0xba   :  { %v189_v27 = vmax.f32 %v185_v25, 0.0  ;;  %v198_v31 = vpop.permute.xlu1 %197 }
  0xbc   :  { %v390_v28 = vpack.c.bf16 %v189_v27, %v188_v26 }
  0xbe   :  { %391 = vmatprep.subr.bf16.mxu0 %v390_v28  ;;  %395 = vmatprep.subr.bf16.mxu1 %v390_v28  ;;  %v203_v34 = vpop.permute.xlu1 %202 }
  0xbf   :  { %393 = vmatpush3.bf16.msra.mxu0 %v390_v28  ;;  %397 = vmatpush3.bf16.msra.mxu1 %v390_v28 }
  0xc2   :  { %381 = vmatmul.mubr.msk.f32.vlgmr.msra.gmra.mrb[0].mxu0 %vm210_vm0, %v37_v29  ;;  %384 = vmatmul.mubr.msk.f32.vlgmr.msra.gmra.mrb[0].mxu1 %vm210_vm0, %v39_v30  ;;  %v315_v37 = vpop.permute.xlu1 %314 }
  0xc6   :  { %v325_v53 = vpop.permute.xlu1 %324 }
  0xca   :  { %v348_v0 = vpop.permute.xlu1 %347 }
  0xcb   :  { %v353_v2 = vrot.slane %v348_v0, %v72_v36 }
 0x195   :  { %v382_v38 = vpop.f32.mrb[0].mxu0  ;;  %v385_v39 = vpop.f32.mrb[0].mxu1 }
 0x196   :  { %v295_v40 = vadd.f32 %v382_v38, %v198_v31  ;;  %v289_v41 = vpop.f32.mrb[1].mxu0  ;;  %v299_v42 = vpop.f32.mrb[1].mxu1  ;;  %v305_v43 = vadd.f32 %v385_v39, %v208_v35 }
 0x197   :  { %v290_v44 = vadd.f32 %v289_v41, %v193_v32  ;;  %v300_v45 = vadd.f32 %v299_v42, %v203_v34 }
 0x198   :  { %v309_v47 = vmax.f32 %v295_v40, 0.0  ;;  %v311_v51 = vmax.f32 %v305_v43, 0.0 }
 0x199   :  { %v308_v48 = vmax.f32 %v290_v44, 0.0  ;;  %v310_v49 = vmax.f32 %v300_v45, 0.0 }
 0x19a   :  { %v333_v50 = vmul.f32 %v320_v46, %v309_v47  ;;  %v335_v57 = vmul.f32 %v330_v56, %v311_v51 }
 0x19b   :  { %v332_v52 = vmul.f32 %v315_v37, %v308_v48  ;;  %v334_v55 = vmul.f32 %v325_v53, %v310_v49 }
 0x19d   :  { %v336_v54 = vadd.f32 %v333_v50, %v332_v52 }
 0x19f   :  { %v337_v58 = vadd.f32 %v336_v54, %v334_v55 }
 0x1a1   :  { %v338_v59 = vadd.f32 %v337_v58, %v335_v57 }
 0x1a3   :  { %v339_v60 = vrot.slane %v338_v59, 4 }
 0x1a5   :  { %v340_v61 = vadd.f32 %v339_v60, %v338_v59 }
 0x1a7   :  { %v341_v62 = vrot.slane %v340_v61, 2 }
 0x1a9   :  { %v342_v63 = vadd.f32 %v341_v62, %v340_v61 }
 0x1ab   :  { %v343_v1 = vrot.slane %v342_v63, 1 }
 0x1ad   :  { %v344_v3 = vadd.f32 %v343_v1, %v342_v63 }
 0x1af   :  { %v354_v4 = vadd.f32 %v353_v2, %v344_v3 }
 0x1b1   :  { %355 = vst [vmem:[%s550_s7] sm:$0x1] %v354_v4 }

</bundles_post_ra>
